<compile_context>
chip_gen: v5e
topology: v5e:2x2
jax: 0.10.0
libtpu: 0.0.40
codegen_flags: <defaults>
</compile_context>

<pallas_src>
import jax
import jax.numpy as jnp
from jax.experimental import pallas as pl
from jax.experimental.pallas import tpu as pltpu


def _chomp_copy_kernel(x_ref, o_ref):
    # Aligned fast path: the input block already excludes the chomped columns.
    o_ref[...] = x_ref[...]


def _chomp_slice_kernel(x_ref, o_ref):
    # General path: input block carries the full L columns; keep the leading
    # L_out ones. Slice start is 0, so this is only a masked tail on the last
    # 128-lane tile (no lane-crossing shuffle).
    o_ref[...] = x_ref[:, : o_ref.shape[1]]


def _row_tile(n_rows: int, bytes_per_row: int) -> int:
    """Row-chunk size: as large as a modest per-buffer VMEM budget allows,
    rounded to a multiple of 32 sublanes (legal for f32/bf16/int8 packing),
    or the full row count if it already fits in a single block."""
    budget = 8 * 1024 * 1024  # per (in+out) block; x2 double-buffer ~= 16 MiB total
    cap = (budget // max(bytes_per_row, 1)) // 32 * 32
    cap = max(32, min(2048, cap))  # floor of 32 is fine for any realistic TCN length
    if n_rows <= cap:
        return n_rows              # block == full dim: always a legal block shape
    return cap                     # multiple of 32: legal block shape for packed dtypes


def chomp1d(x: jax.Array, chomp_size: int) -> jax.Array:
    """Pallas equivalent of Chomp1d(chomp_size).forward(x), x of shape (N, C, L)."""
    assert x.ndim == 3, "expected (N, C, L)"
    n, c, l = x.shape
    assert 0 <= chomp_size < l, "chomp_size must be in [0, L)"
    if chomp_size == 0:
        # torch: x[:, :, :-0] == x[:, :, :0] -> empty last dim.
        return x[:, :, :0]

    l_out = l - chomp_size
    nr = n * c
    x2 = x.reshape(nr, l)  # free for a contiguous NCL tensor

    itemsize = jnp.dtype(x.dtype).itemsize
    tr = _row_tile(nr, (l + l_out) * itemsize)
    grid = (pl.cdiv(nr, tr),)

    if l_out % 128 == 0:
        # Lane-aligned: never DMA the chomped columns; body is a pure copy.
        kernel = _chomp_copy_kernel
        in_spec = pl.BlockSpec((tr, l_out), lambda i: (i, 0))
    else:
        # Unaligned: read full-L rows, drop the tail in VMEM.
        kernel = _chomp_slice_kernel
        in_spec = pl.BlockSpec((tr, l), lambda i: (i, 0))

    out2 = pl.pallas_call(
        kernel,
        out_shape=jax.ShapeDtypeStruct((nr, l_out), x.dtype),
        grid_spec=pltpu.PrefetchScalarGridSpec(
            num_scalar_prefetch=0,
            grid=grid,
            in_specs=[in_spec],
            out_specs=pl.BlockSpec((tr, l_out), lambda i: (i, 0)),
        ),
        compiler_params=pltpu.CompilerParams(
            dimension_semantics=("parallel",),  # shards row chunks across v7x's 2 TCs
        ),
    )(x2)

    return out2.reshape(n, c, l_out)


if __name__ == "__main__":
    key = jax.random.PRNGKey(0)
    k1, k2 = jax.random.split(key)

    # Case 1: unaligned L_out (general path) — tiny shape consistent with the module.
    N, C, L, chomp = 2, 4, 16, 3
    x1 = jax.random.normal(k1, (N, C, L), dtype=jnp.float32)
    out1 = jax.block_until_ready(chomp1d(x1, chomp))
    ref1 = x1[:, :, :-chomp]
    assert out1.shape == (N, C, L - chomp), out1.shape
    assert out1.dtype == x1.dtype
    assert jnp.array_equal(out1, ref1), "general path mismatch vs reference slice"

    # Case 2: lane-aligned L_out (fast path: chomped columns never DMA'd).
    N2, C2, L2, chomp2 = 2, 4, 160, 32  # L_out = 128
    x2 = jax.random.normal(k2, (N2, C2, L2), dtype=jnp.float32)
    out2 = jax.block_until_ready(chomp1d(x2, chomp2))
    ref2 = x2[:, :, :-chomp2]
    assert out2.shape == (N2, C2, L2 - chomp2), out2.shape
    assert out2.dtype == x2.dtype
    assert jnp.array_equal(out2, ref2), "aligned path mismatch vs reference slice"

    print("KERNEL_OK")
</pallas_src>

<mosaic_0001>
module attributes {stable_mosaic.version = 11 : i64} {
  func.func @_chomp_slice_kernel(%arg0: i32, %arg1: memref<8x16xf32, #tpu.memory_space<vmem>>, %arg2: memref<8x13xf32, #tpu.memory_space<vmem>>) attributes {dimension_semantics = [#tpu.dimension_semantics<parallel>], iteration_bounds = array<i64: 1>, scalar_prefetch = 0 : i64, scratch_operands = 0 : i64, tpu.core_type = #tpu.core_type<tc>, window_params = [{transform_indices = @transform_0, window_bounds = array<i64: 8, 16>}, {transform_indices = @transform_1, window_bounds = array<i64: 8, 13>}]} {
    %c0 = arith.constant 0 : index
    %c0_0 = arith.constant 0 : index
    %0 = vector.load %arg1[%c0, %c0_0] : memref<8x16xf32, #tpu.memory_space<vmem>>, vector<8x13xf32>
    %c0_1 = arith.constant 0 : index
    %c0_2 = arith.constant 0 : index
    %1 = vector.load %arg2[%c0_1, %c0_2] : memref<8x13xf32, #tpu.memory_space<vmem>>, vector<8x13xf32>
    tpu.vector_store %arg2[%c0_1, %c0_2], %0 {strides = array<i32>} : memref<8x13xf32, #tpu.memory_space<vmem>>, vector<8x13xf32>,
    return
  }
  func.func @transform_0(%arg0: i32) -> (i32, i32) {
    %c0_i32 = arith.constant 0 : i32
    %c0_i32_0 = arith.constant 0 : i32
    return %arg0, %c0_i32 : i32, i32
  }
  func.func @transform_1(%arg0: i32) -> (i32, i32) {
    %c0_i32 = arith.constant 0 : i32
    %c0_i32_0 = arith.constant 0 : i32
    return %arg0, %c0_i32 : i32, i32
  }
}

</mosaic_0001>

<bundles_post_ra>
// kernel: tpu_custom_call.1
= control target key start
LH: loop header
LB: loop body
LE: loop exit
PB: predicated region body
PF: predicated region fallthrough
CT: control target
= control target key end

     0   :  { %6 = vsyncpa [#allocation3], 0  ;;  %s115_s0 = inlined_call_operand.hbm [shape: f32[8,16], index: 0, kind: input, shape index: {}]   ;;  %s116_s1 = inlined_call_operand.hbm [shape: f32[8,13], index: 1, kind: output, shape index: {}]  }
   0x1   :  { %7 = vsyncpa [#allocation4], 0  ;;  %s13_s8 = sshll.u32 %s115_s0, 4  ;;  %s97_s9 = smov [#allocation2]   ;;  %s14_s8 = int_to_ptr.hbm [resolvable:$true] %s13_s8 }
   0x2   :  { %s15_s10 = sshll.u32 %s97_s9, 4  ;;  %s16_s10 = int_to_ptr.vmem [resolvable:$true] %s15_s10 }
   0x3   :  { %18 = dma.hbm_to_vmem [thread:$0]  %s14_s8, 128, %s16_s10, [#allocation3]  }
   0x4   :  { %93 = dma.done.wait [#allocation3], 128  }
   0x5   :  { %94 = vsyncadd [#allocation3], 4294967168  ;;  %s98_s11 = smov [#allocation5]   ;;  %s33_s15 = sshll.u32 %s116_s1, 4  ;;  %vm24_vm0 = vcmask 105472   ;;  %v23_v0 = vld [vmem:[#allocation2] sm:$0xff]  ;;  %s34_s15 = int_to_ptr.hbm [resolvable:$true] %s33_s15 }
   0x6   :  { %s31_s12 = sshll.u32 %s98_s11, 4  ;;  %25 = vst.msk [vmem:[#allocation5] sm:$0xff] %vm24_vm0, %v23_v0  ;;  %s32_s12 = int_to_ptr.vmem [resolvable:$true] %s31_s12 }
   0x7   :  { %36 = dma.vmem_to_hbm [thread:$0]  %s32_s12, 128, %s34_s15, [#allocation4]  }
   0x8   :  { %95 = dma.done.wait [#allocation4], 128  }
   0x9   :  { %96 = vsyncadd [#allocation4], 4294967168 }
   0xa   :  { %41 = vsyncpa [#allocation3], 1 }
   0xb   :  { %42 = vsyncpa [#allocation4], 1 }

</bundles_post_ra>
